<compile_context>
chip_gen: v7x
topology: tpu7x:2x2x1
jax: 0.10.0
libtpu: 0.0.40
codegen_flags: <defaults>
</compile_context>

<pallas_src>
import functools

import jax
import jax.numpy as jnp
import numpy as np
from jax.experimental import pallas as pl
from jax.experimental.pallas import tpu as pltpu


# ----------------------------- config ----------------------------------------
Z_DIM = 32
HIDDEN_DIM = 128           # must be 128 for the packed (128,128) weight pages
LAYERS = 2
COL_TYPE = ["one-hot", "gmm", "binary", "normalize", "ordinal"]
COL_IND = [(0, 4), (4, 9), (9, 10), (10, 12), (12, 15)]
X_DIM = 15
X_PAD = 128                # lane-dense padded output width
K_PAD = 128                # padded contraction dim for the input layer
BATCH = 8
BN_EPS = 1e-5
# condition=False, c_dim=0 in this instantiation.


# ----------------------------- the kernel ------------------------------------
def vgan_kernel(layers, n_smax, eps, z_ref, w_ref, aux_ref, out_ref):
    """z_ref: (B,128) bf16 | w_ref: (layers+2,128,128) bf16 | aux_ref: (R,128) f32."""
    B = out_ref.shape[0]
    inv_b = 1.0 / B
    aux = aux_ref[...]                       # (R, 128) f32

    def batchnorm(x, row):
        # Training-mode BatchNorm1d (biased batch variance), single-pass stats:
        # the two reductions are independent so they overlap on the XLU.
        gamma = aux[row:row + 1, :]
        beta = aux[row + 1:row + 2, :]
        s1 = jnp.sum(x, axis=0, keepdims=True)
        s2 = jnp.sum(x * x, axis=0, keepdims=True)
        mean = s1 * inv_b
        var = s2 * inv_b - mean * mean
        return gamma * ((x - mean) * jax.lax.rsqrt(var + eps)) + beta

    # ---- input + hidden layers: identical (B,128)x(128,128) bf16 matmuls ----
    # Linear biases omitted: they cancel exactly under batch-statistics BN.
    h = z_ref[...]                                           # bf16
    for i in range(layers + 1):
        h = jnp.dot(h, w_ref[i], preferred_element_type=jnp.float32)
        h = jnp.maximum(batchnorm(h, 2 * i), 0.0).astype(jnp.bfloat16)

    # ---- output layer (padded to 128 lanes; pad columns stay exactly 0) -----
    x = jnp.dot(h, w_ref[layers + 1], preferred_element_type=jnp.float32)
    x = batchnorm(x, 2 * (layers + 1))

    # ---- per-column activations ----------------------------------------------
    # Precomputed rows (built trace-time in init, loaded with the same DMA):
    #   act_scale: 0.5 on sigmoid cols, 1.0 elsewhere
    #   st_scale : 0.5 on sigmoid cols, 1.0 on tanh cols, 0 elsewhere
    #   st_bias  : 0.5 on sigmoid cols, 0 elsewhere
    #   per softmax group g: msk_g (0/1 indicator), off_g (0 in group, -1e30 out)
    base = 2 * (layers + 2)
    act_scale = aux[base + 0:base + 1, :]
    st_scale = aux[base + 1:base + 2, :]
    st_bias = aux[base + 2:base + 3, :]

    # one EUP tanh pass covers both sigmoid and tanh columns
    t = jnp.tanh(x * act_scale)
    result = t * st_scale + st_bias          # zero outside sigmoid/tanh columns

    if n_smax > 0:
        # fused softmax over all groups: one EUP exp pass total
        shift = None
        masks = []
        for g in range(n_smax):
            msk = aux[base + 3 + 2 * g:base + 4 + 2 * g, :]
            off = aux[base + 4 + 2 * g:base + 5 + 2 * g, :]
            gmax = jnp.max(x + off, axis=1, keepdims=True)   # masked group max
            contrib = msk * gmax
            shift = contrib if shift is None else shift + contrib
            masks.append(msk)
        e = jnp.exp(x - shift)
        mix = None
        for msk in masks:
            gsum = jnp.sum(e * msk, axis=1, keepdims=True)
            r = msk * (1.0 / gsum)           # exact reciprocal (probs sum to 1)
            mix = r if mix is None else mix + r
        result = result + e * mix            # zero outside softmax groups

    # single lane-dense (B, 128) store
    out_ref[...] = result


# ----------------------------- parameter packing -----------------------------
def init_params(key, z_dim=Z_DIM, hidden_dim=HIDDEN_DIM, x_dim=X_DIM,
                layers=LAYERS, x_pad=X_PAD, k_pad=K_PAD,
                col_type=COL_TYPE, col_ind=COL_IND):
    """Synthetic init mirroring the PyTorch module's shapes, packed into slabs."""
    assert hidden_dim == x_pad == k_pad == 128, "packed slab assumes width 128"
    ks = iter(jax.random.split(key, 64))

    def nrm(shape, scale=0.1):
        return (scale * jax.random.normal(next(ks), shape)).astype(jnp.float32)

    # weight slab: page 0 = padded w_in, pages 1..layers = w_hid, last = padded w_out
    pages = [jnp.zeros((k_pad, hidden_dim), jnp.float32)
             .at[:z_dim, :].set(nrm((z_dim, hidden_dim)))]
    for _ in range(layers):
        pages.append(nrm((hidden_dim, hidden_dim)))
    pages.append(jnp.zeros((hidden_dim, x_pad), jnp.float32)
                 .at[:, :x_dim].set(nrm((hidden_dim, x_dim))))
    w_all = jnp.stack(pages, axis=0).astype(jnp.bfloat16)

    # aux slab: BN gamma/beta rows, then activation mask/scale/bias rows
    rows = []
    for _ in range(layers + 1):                       # inputbn + per-hidden BN
        rows.append(1.0 + nrm((hidden_dim,)))         # gamma
        rows.append(nrm((hidden_dim,)))               # beta
    rows.append(jnp.zeros((x_pad,), jnp.float32).at[:x_dim].set(1.0 + nrm((x_dim,))))
    rows.append(jnp.zeros((x_pad,), jnp.float32).at[:x_dim].set(nrm((x_dim,))))

    act_scale = np.ones((x_pad,), np.float32)
    st_scale = np.zeros((x_pad,), np.float32)
    st_bias = np.zeros((x_pad,), np.float32)
    smax_groups = []
    for i, ct in enumerate(col_type):
        sta, end = col_ind[i]
        if ct in ("binary", "ordinal"):               # sigmoid = 0.5*tanh(0.5x)+0.5
            act_scale[sta:end] = 0.5
            st_scale[sta:end] = 0.5
            st_bias[sta:end] = 0.5
        elif ct == "normalize":                       # tanh
            st_scale[sta:end] = 1.0
        elif ct == "one-hot":                         # softmax group
            smax_groups.append((sta, end))
        elif ct == "gmm":                             # tanh value + softmax weights
            st_scale[sta] = 1.0
            smax_groups.append((sta + 1, end))
        else:
            raise NotImplementedError(ct)             # 'origin' unused by forward()

    rows += [jnp.asarray(act_scale), jnp.asarray(st_scale), jnp.asarray(st_bias)]
    for sta, end in smax_groups:
        msk = np.zeros((x_pad,), np.float32)
        msk[sta:end] = 1.0
        off = np.full((x_pad,), -1e30, np.float32)
        off[sta:end] = 0.0
        rows += [jnp.asarray(msk), jnp.asarray(off)]

    pad = (-len(rows)) % 8                            # sublane-align the slab
    rows += [jnp.zeros((x_pad,), jnp.float32)] * pad
    aux = jnp.stack(rows, axis=0)

    return {"w_all": w_all, "aux": aux,
            "layers": layers, "n_smax": len(smax_groups), "z_dim": z_dim}


# ----------------------------- wrapper ----------------------------------------
def vgan_generator_forward(z, params, x_dim=X_DIM, eps=BN_EPS):
    B, z_dim = z.shape
    w_all, aux = params["w_all"], params["aux"]
    layers, n_smax = params["layers"], params["n_smax"]
    k_pad, x_pad = w_all.shape[1], w_all.shape[2]

    # pad K to 128 and cast to bf16 once so every matmul has the same MXU shape
    z_p = jnp.zeros((B, k_pad), jnp.bfloat16).at[:, :z_dim].set(z.astype(jnp.bfloat16))

    kernel = functools.partial(vgan_kernel, layers, n_smax, eps)
    vmem = pl.BlockSpec(memory_space=pltpu.MemorySpace.VMEM)

    out = pl.pallas_call(
        kernel,
        out_shape=jax.ShapeDtypeStruct((B, x_pad), jnp.float32),
        in_specs=[vmem, vmem, vmem],
        out_specs=vmem,
    )(z_p, w_all, aux)
    return out[:, :x_dim]


# ----------------------------- pure-JAX reference -----------------------------
def vgan_reference(z, params, col_type=COL_TYPE, col_ind=COL_IND,
                   x_dim=X_DIM, eps=BN_EPS):
    w_all = params["w_all"].astype(jnp.float32)
    aux = params["aux"]
    layers, z_dim = params["layers"], params["z_dim"]

    def bn(x, row):
        gamma = aux[row, :x.shape[1]]
        beta = aux[row + 1, :x.shape[1]]
        mean = jnp.mean(x, axis=0, keepdims=True)
        var = jnp.mean(jnp.square(x - mean), axis=0, keepdims=True)
        return gamma * (x - mean) / jnp.sqrt(var + eps) + beta

    h = z @ w_all[0, :z_dim, :]
    h = jax.nn.relu(bn(h, 0))
    for i in range(layers):
        h = h @ w_all[i + 1]
        h = jax.nn.relu(bn(h, 2 * (i + 1)))
    x = bn(h @ w_all[layers + 1][:, :x_dim], 2 * (layers + 1))

    pieces = []
    for i, ct in enumerate(col_type):
        sta, end = col_ind[i]
        if ct in ("binary", "ordinal"):
            pieces.append(jax.nn.sigmoid(x[:, sta:end]))
        elif ct == "normalize":
            pieces.append(jnp.tanh(x[:, sta:end]))
        elif ct == "one-hot":
            pieces.append(jax.nn.softmax(x[:, sta:end], axis=1))
        elif ct == "gmm":
            pieces.append(jnp.tanh(x[:, sta:sta + 1]))
            pieces.append(jax.nn.softmax(x[:, sta + 1:end], axis=1))
    return jnp.concatenate(pieces, axis=1)


# ----------------------------- main -------------------------------------------
if __name__ == "__main__":
    key = jax.random.PRNGKey(0)
    k_z, k_p = jax.random.split(key)

    z = jax.random.normal(k_z, (BATCH, Z_DIM), dtype=jnp.float32)
    params = init_params(k_p)

    out = vgan_generator_forward(z, params)
    out = jax.block_until_ready(out)

    assert out.shape == (BATCH, X_DIM), out.shape
    assert bool(jnp.all(jnp.isfinite(out)))

    ref = vgan_reference(z, params)
    err = float(jnp.max(jnp.abs(out - ref)))
    assert err < 7.5e-2, f"max abs error {err}"

    print("KERNEL_OK")
</pallas_src>

<mosaic_0001>
module attributes {stable_mosaic.version = 11 : i64} {
  func.func @vgan_kernel(%arg0: memref<8x128xbf16, #tpu.memory_space<vmem>>, %arg1: memref<4x128x128xbf16, #tpu.memory_space<vmem>>, %arg2: memref<16x128xf32, #tpu.memory_space<vmem>>, %arg3: memref<8x128xf32, #tpu.memory_space<vmem>>) attributes {dimension_semantics = [], scalar_prefetch = 0 : i64, scratch_operands = 0 : i64, tpu.core_type = #tpu.core_type<tc>} {
    %c0 = arith.constant 0 : index
    %c0_0 = arith.constant 0 : index
    %0 = vector.load %arg2[%c0, %c0_0] : memref<16x128xf32, #tpu.memory_space<vmem>>, vector<16x128xf32>
    %c0_1 = arith.constant 0 : index
    %c0_2 = arith.constant 0 : index
    %1 = vector.load %arg0[%c0_1, %c0_2] : memref<8x128xbf16, #tpu.memory_space<vmem>>, vector<8x128xbf16>
    %c0_3 = arith.constant 0 : index
    %c0_4 = arith.constant 0 : index
    %c0_5 = arith.constant 0 : index
    %2 = vector.load %arg1[%c0_3, %c0_4, %c0_5] : memref<4x128x128xbf16, #tpu.memory_space<vmem>>, vector<1x128x128xbf16>
    %3 = vector.shape_cast %2 : vector<1x128x128xbf16> to vector<128x128xbf16>
    %cst = arith.constant dense<0.000000e+00> : vector<8x128xf32>
    %4 = tpu.matmul %1, %3, %cst {dimension_numbers = #tpu.dot_dimension_numbers<[1], [0], [0], [1], [0, 0, 1, 1], [], []>} : vector<8x128xbf16>, vector<128x128xbf16>, vector<8x128xf32> -> vector<8x128xf32>
    %5 = vector.extract_strided_slice %0 {offsets = [0, 0], sizes = [1, 128], strides = [1, 1]} : vector<16x128xf32> to vector<1x128xf32>
    %6 = vector.extract_strided_slice %0 {offsets = [1, 0], sizes = [1, 128], strides = [1, 1]} : vector<16x128xf32> to vector<1x128xf32>
    %cst_6 = arith.constant dense<0.000000e+00> : vector<128xf32>
    %7 = vector.multi_reduction <add>, %4, %cst_6 [0] : vector<8x128xf32> to vector<128xf32>
    %8 = vector.shape_cast %7 : vector<128xf32> to vector<1x128xf32>
    %9 = arith.mulf %4, %4 : vector<8x128xf32>
    %cst_7 = arith.constant dense<0.000000e+00> : vector<128xf32>
    %10 = vector.multi_reduction <add>, %9, %cst_7 [0] : vector<8x128xf32> to vector<128xf32>
    %11 = vector.shape_cast %10 : vector<128xf32> to vector<1x128xf32>
    %cst_8 = arith.constant 1.250000e-01 : f32
    %12 = vector.broadcast %cst_8 : f32 to vector<1x128xf32>
    %13 = arith.mulf %8, %12 : vector<1x128xf32>
    %cst_9 = arith.constant 1.250000e-01 : f32
    %14 = vector.broadcast %cst_9 : f32 to vector<1x128xf32>
    %15 = arith.mulf %11, %14 : vector<1x128xf32>
    %16 = arith.mulf %13, %13 : vector<1x128xf32>
    %17 = arith.subf %15, %16 : vector<1x128xf32>
    %18 = vector.broadcast %13 : vector<1x128xf32> to vector<8x128xf32>
    %19 = arith.subf %4, %18 : vector<8x128xf32>
    %cst_10 = arith.constant 9.99999974E-6 : f32
    %20 = vector.broadcast %cst_10 : f32 to vector<1x128xf32>
    %21 = arith.addf %17, %20 : vector<1x128xf32>
    %22 = math.rsqrt %21 : vector<1x128xf32>
    %23 = vector.broadcast %22 : vector<1x128xf32> to vector<8x128xf32>
    %24 = arith.mulf %19, %23 : vector<8x128xf32>
    %25 = vector.broadcast %5 : vector<1x128xf32> to vector<8x128xf32>
    %26 = arith.mulf %25, %24 : vector<8x128xf32>
    %27 = vector.broadcast %6 : vector<1x128xf32> to vector<8x128xf32>
    %28 = arith.addf %26, %27 : vector<8x128xf32>
    %cst_11 = arith.constant 0.000000e+00 : f32
    %29 = vector.broadcast %cst_11 : f32 to vector<8x128xf32>
    %30 = arith.maximumf %28, %29 : vector<8x128xf32>
    %31 = arith.truncf %30 : vector<8x128xf32> to vector<8x128xbf16>
    %c1 = arith.constant 1 : index
    %c0_12 = arith.constant 0 : index
    %c0_13 = arith.constant 0 : index
    %32 = vector.load %arg1[%c1, %c0_12, %c0_13] : memref<4x128x128xbf16, #tpu.memory_space<vmem>>, vector<1x128x128xbf16>
    %33 = vector.shape_cast %32 : vector<1x128x128xbf16> to vector<128x128xbf16>
    %cst_14 = arith.constant dense<0.000000e+00> : vector<8x128xf32>
    %34 = tpu.matmul %31, %33, %cst_14 {dimension_numbers = #tpu.dot_dimension_numbers<[1], [0], [0], [1], [0, 0, 1, 1], [], []>} : vector<8x128xbf16>, vector<128x128xbf16>, vector<8x128xf32> -> vector<8x128xf32>
    %35 = vector.extract_strided_slice %0 {offsets = [2, 0], sizes = [1, 128], strides = [1, 1]} : vector<16x128xf32> to vector<1x128xf32>
    %36 = vector.extract_strided_slice %0 {offsets = [3, 0], sizes = [1, 128], strides = [1, 1]} : vector<16x128xf32> to vector<1x128xf32>
    %cst_15 = arith.constant dense<0.000000e+00> : vector<128xf32>
    %37 = vector.multi_reduction <add>, %34, %cst_15 [0] : vector<8x128xf32> to vector<128xf32>
    %38 = vector.shape_cast %37 : vector<128xf32> to vector<1x128xf32>
    %39 = arith.mulf %34, %34 : vector<8x128xf32>
    %cst_16 = arith.constant dense<0.000000e+00> : vector<128xf32>
    %40 = vector.multi_reduction <add>, %39, %cst_16 [0] : vector<8x128xf32> to vector<128xf32>
    %41 = vector.shape_cast %40 : vector<128xf32> to vector<1x128xf32>
    %cst_17 = arith.constant 1.250000e-01 : f32
    %42 = vector.broadcast %cst_17 : f32 to vector<1x128xf32>
    %43 = arith.mulf %38, %42 : vector<1x128xf32>
    %cst_18 = arith.constant 1.250000e-01 : f32
    %44 = vector.broadcast %cst_18 : f32 to vector<1x128xf32>
    %45 = arith.mulf %41, %44 : vector<1x128xf32>
    %46 = arith.mulf %43, %43 : vector<1x128xf32>
    %47 = arith.subf %45, %46 : vector<1x128xf32>
    %48 = vector.broadcast %43 : vector<1x128xf32> to vector<8x128xf32>
    %49 = arith.subf %34, %48 : vector<8x128xf32>
    %cst_19 = arith.constant 9.99999974E-6 : f32
    %50 = vector.broadcast %cst_19 : f32 to vector<1x128xf32>
    %51 = arith.addf %47, %50 : vector<1x128xf32>
    %52 = math.rsqrt %51 : vector<1x128xf32>
    %53 = vector.broadcast %52 : vector<1x128xf32> to vector<8x128xf32>
    %54 = arith.mulf %49, %53 : vector<8x128xf32>
    %55 = vector.broadcast %35 : vector<1x128xf32> to vector<8x128xf32>
    %56 = arith.mulf %55, %54 : vector<8x128xf32>
    %57 = vector.broadcast %36 : vector<1x128xf32> to vector<8x128xf32>
    %58 = arith.addf %56, %57 : vector<8x128xf32>
    %cst_20 = arith.constant 0.000000e+00 : f32
    %59 = vector.broadcast %cst_20 : f32 to vector<8x128xf32>
    %60 = arith.maximumf %58, %59 : vector<8x128xf32>
    %61 = arith.truncf %60 : vector<8x128xf32> to vector<8x128xbf16>
    %c2 = arith.constant 2 : index
    %c0_21 = arith.constant 0 : index
    %c0_22 = arith.constant 0 : index
    %62 = vector.load %arg1[%c2, %c0_21, %c0_22] : memref<4x128x128xbf16, #tpu.memory_space<vmem>>, vector<1x128x128xbf16>
    %63 = vector.shape_cast %62 : vector<1x128x128xbf16> to vector<128x128xbf16>
    %cst_23 = arith.constant dense<0.000000e+00> : vector<8x128xf32>
    %64 = tpu.matmul %61, %63, %cst_23 {dimension_numbers = #tpu.dot_dimension_numbers<[1], [0], [0], [1], [0, 0, 1, 1], [], []>} : vector<8x128xbf16>, vector<128x128xbf16>, vector<8x128xf32> -> vector<8x128xf32>
    %65 = vector.extract_strided_slice %0 {offsets = [4, 0], sizes = [1, 128], strides = [1, 1]} : vector<16x128xf32> to vector<1x128xf32>
    %66 = vector.extract_strided_slice %0 {offsets = [5, 0], sizes = [1, 128], strides = [1, 1]} : vector<16x128xf32> to vector<1x128xf32>
    %cst_24 = arith.constant dense<0.000000e+00> : vector<128xf32>
    %67 = vector.multi_reduction <add>, %64, %cst_24 [0] : vector<8x128xf32> to vector<128xf32>
    %68 = vector.shape_cast %67 : vector<128xf32> to vector<1x128xf32>
    %69 = arith.mulf %64, %64 : vector<8x128xf32>
    %cst_25 = arith.constant dense<0.000000e+00> : vector<128xf32>
    %70 = vector.multi_reduction <add>, %69, %cst_25 [0] : vector<8x128xf32> to vector<128xf32>
    %71 = vector.shape_cast %70 : vector<128xf32> to vector<1x128xf32>
    %cst_26 = arith.constant 1.250000e-01 : f32
    %72 = vector.broadcast %cst_26 : f32 to vector<1x128xf32>
    %73 = arith.mulf %68, %72 : vector<1x128xf32>
    %cst_27 = arith.constant 1.250000e-01 : f32
    %74 = vector.broadcast %cst_27 : f32 to vector<1x128xf32>
    %75 = arith.mulf %71, %74 : vector<1x128xf32>
    %76 = arith.mulf %73, %73 : vector<1x128xf32>
    %77 = arith.subf %75, %76 : vector<1x128xf32>
    %78 = vector.broadcast %73 : vector<1x128xf32> to vector<8x128xf32>
    %79 = arith.subf %64, %78 : vector<8x128xf32>
    %cst_28 = arith.constant 9.99999974E-6 : f32
    %80 = vector.broadcast %cst_28 : f32 to vector<1x128xf32>
    %81 = arith.addf %77, %80 : vector<1x128xf32>
    %82 = math.rsqrt %81 : vector<1x128xf32>
    %83 = vector.broadcast %82 : vector<1x128xf32> to vector<8x128xf32>
    %84 = arith.mulf %79, %83 : vector<8x128xf32>
    %85 = vector.broadcast %65 : vector<1x128xf32> to vector<8x128xf32>
    %86 = arith.mulf %85, %84 : vector<8x128xf32>
    %87 = vector.broadcast %66 : vector<1x128xf32> to vector<8x128xf32>
    %88 = arith.addf %86, %87 : vector<8x128xf32>
    %cst_29 = arith.constant 0.000000e+00 : f32
    %89 = vector.broadcast %cst_29 : f32 to vector<8x128xf32>
    %90 = arith.maximumf %88, %89 : vector<8x128xf32>
    %91 = arith.truncf %90 : vector<8x128xf32> to vector<8x128xbf16>
    %c3 = arith.constant 3 : index
    %c0_30 = arith.constant 0 : index
    %c0_31 = arith.constant 0 : index
    %92 = vector.load %arg1[%c3, %c0_30, %c0_31] : memref<4x128x128xbf16, #tpu.memory_space<vmem>>, vector<1x128x128xbf16>
    %93 = vector.shape_cast %92 : vector<1x128x128xbf16> to vector<128x128xbf16>
    %cst_32 = arith.constant dense<0.000000e+00> : vector<8x128xf32>
    %94 = tpu.matmul %91, %93, %cst_32 {dimension_numbers = #tpu.dot_dimension_numbers<[1], [0], [0], [1], [0, 0, 1, 1], [], []>} : vector<8x128xbf16>, vector<128x128xbf16>, vector<8x128xf32> -> vector<8x128xf32>
    %95 = vector.extract_strided_slice %0 {offsets = [6, 0], sizes = [1, 128], strides = [1, 1]} : vector<16x128xf32> to vector<1x128xf32>
    %96 = vector.extract_strided_slice %0 {offsets = [7, 0], sizes = [1, 128], strides = [1, 1]} : vector<16x128xf32> to vector<1x128xf32>
    %cst_33 = arith.constant dense<0.000000e+00> : vector<128xf32>
    %97 = vector.multi_reduction <add>, %94, %cst_33 [0] : vector<8x128xf32> to vector<128xf32>
    %98 = vector.shape_cast %97 : vector<128xf32> to vector<1x128xf32>
    %99 = arith.mulf %94, %94 : vector<8x128xf32>
    %cst_34 = arith.constant dense<0.000000e+00> : vector<128xf32>
    %100 = vector.multi_reduction <add>, %99, %cst_34 [0] : vector<8x128xf32> to vector<128xf32>
    %101 = vector.shape_cast %100 : vector<128xf32> to vector<1x128xf32>
    %cst_35 = arith.constant 1.250000e-01 : f32
    %102 = vector.broadcast %cst_35 : f32 to vector<1x128xf32>
    %103 = arith.mulf %98, %102 : vector<1x128xf32>
    %cst_36 = arith.constant 1.250000e-01 : f32
    %104 = vector.broadcast %cst_36 : f32 to vector<1x128xf32>
    %105 = arith.mulf %101, %104 : vector<1x128xf32>
    %106 = arith.mulf %103, %103 : vector<1x128xf32>
    %107 = arith.subf %105, %106 : vector<1x128xf32>
    %108 = vector.broadcast %103 : vector<1x128xf32> to vector<8x128xf32>
    %109 = arith.subf %94, %108 : vector<8x128xf32>
    %cst_37 = arith.constant 9.99999974E-6 : f32
    %110 = vector.broadcast %cst_37 : f32 to vector<1x128xf32>
    %111 = arith.addf %107, %110 : vector<1x128xf32>
    %112 = math.rsqrt %111 : vector<1x128xf32>
    %113 = vector.broadcast %112 : vector<1x128xf32> to vector<8x128xf32>
    %114 = arith.mulf %109, %113 : vector<8x128xf32>
    %115 = vector.broadcast %95 : vector<1x128xf32> to vector<8x128xf32>
    %116 = arith.mulf %115, %114 : vector<8x128xf32>
    %117 = vector.broadcast %96 : vector<1x128xf32> to vector<8x128xf32>
    %118 = arith.addf %116, %117 : vector<8x128xf32>
    %119 = vector.extract_strided_slice %0 {offsets = [8, 0], sizes = [1, 128], strides = [1, 1]} : vector<16x128xf32> to vector<1x128xf32>
    %120 = vector.extract_strided_slice %0 {offsets = [9, 0], sizes = [1, 128], strides = [1, 1]} : vector<16x128xf32> to vector<1x128xf32>
    %121 = vector.extract_strided_slice %0 {offsets = [10, 0], sizes = [1, 128], strides = [1, 1]} : vector<16x128xf32> to vector<1x128xf32>
    %122 = vector.broadcast %119 : vector<1x128xf32> to vector<8x128xf32>
    %123 = arith.mulf %118, %122 : vector<8x128xf32>
    %124 = math.tanh %123 : vector<8x128xf32>
    %125 = vector.broadcast %120 : vector<1x128xf32> to vector<8x128xf32>
    %126 = arith.mulf %124, %125 : vector<8x128xf32>
    %127 = vector.broadcast %121 : vector<1x128xf32> to vector<8x128xf32>
    %128 = arith.addf %126, %127 : vector<8x128xf32>
    %129 = vector.extract_strided_slice %0 {offsets = [11, 0], sizes = [1, 128], strides = [1, 1]} : vector<16x128xf32> to vector<1x128xf32>
    %130 = vector.extract_strided_slice %0 {offsets = [12, 0], sizes = [1, 128], strides = [1, 1]} : vector<16x128xf32> to vector<1x128xf32>
    %131 = vector.broadcast %130 : vector<1x128xf32> to vector<8x128xf32>
    %132 = arith.addf %118, %131 : vector<8x128xf32>
    %cst_38 = arith.constant dense<0xFF800000> : vector<8xf32>
    %133 = vector.multi_reduction <maximumf>, %132, %cst_38 [1] : vector<8x128xf32> to vector<8xf32>
    %134 = vector.shape_cast %133 : vector<8xf32> to vector<8x1xf32>
    %135 = vector.broadcast %129 : vector<1x128xf32> to vector<8x128xf32>
    %136 = vector.broadcast %134 : vector<8x1xf32> to vector<8x128xf32>
    %137 = arith.mulf %135, %136 : vector<8x128xf32>
    %138 = vector.extract_strided_slice %0 {offsets = [13, 0], sizes = [1, 128], strides = [1, 1]} : vector<16x128xf32> to vector<1x128xf32>
    %139 = vector.extract_strided_slice %0 {offsets = [14, 0], sizes = [1, 128], strides = [1, 1]} : vector<16x128xf32> to vector<1x128xf32>
    %140 = vector.broadcast %139 : vector<1x128xf32> to vector<8x128xf32>
    %141 = arith.addf %118, %140 : vector<8x128xf32>
    %cst_39 = arith.constant dense<0xFF800000> : vector<8xf32>
    %142 = vector.multi_reduction <maximumf>, %141, %cst_39 [1] : vector<8x128xf32> to vector<8xf32>
    %143 = vector.shape_cast %142 : vector<8xf32> to vector<8x1xf32>
    %144 = vector.broadcast %138 : vector<1x128xf32> to vector<8x128xf32>
    %145 = vector.broadcast %143 : vector<8x1xf32> to vector<8x128xf32>
    %146 = arith.mulf %144, %145 : vector<8x128xf32>
    %147 = arith.addf %137, %146 : vector<8x128xf32>
    %148 = arith.subf %118, %147 : vector<8x128xf32>
    %149 = math.exp %148 : vector<8x128xf32>
    %150 = vector.broadcast %129 : vector<1x128xf32> to vector<8x128xf32>
    %151 = arith.mulf %149, %150 : vector<8x128xf32>
    %cst_40 = arith.constant dense<0.000000e+00> : vector<8xf32>
    %152 = vector.multi_reduction <add>, %151, %cst_40 [1] : vector<8x128xf32> to vector<8xf32>
    %153 = vector.shape_cast %152 : vector<8xf32> to vector<8x1xf32>
    %cst_41 = arith.constant 1.000000e+00 : f32
    %154 = vector.broadcast %cst_41 : f32 to vector<8x1xf32>
    %155 = arith.divf %154, %153 : vector<8x1xf32>
    %156 = vector.broadcast %129 : vector<1x128xf32> to vector<8x128xf32>
    %157 = vector.broadcast %155 : vector<8x1xf32> to vector<8x128xf32>
    %158 = arith.mulf %156, %157 : vector<8x128xf32>
    %159 = vector.broadcast %138 : vector<1x128xf32> to vector<8x128xf32>
    %160 = arith.mulf %149, %159 : vector<8x128xf32>
    %cst_42 = arith.constant dense<0.000000e+00> : vector<8xf32>
    %161 = vector.multi_reduction <add>, %160, %cst_42 [1] : vector<8x128xf32> to vector<8xf32>
    %162 = vector.shape_cast %161 : vector<8xf32> to vector<8x1xf32>
    %cst_43 = arith.constant 1.000000e+00 : f32
    %163 = vector.broadcast %cst_43 : f32 to vector<8x1xf32>
    %164 = arith.divf %163, %162 : vector<8x1xf32>
    %165 = vector.broadcast %138 : vector<1x128xf32> to vector<8x128xf32>
    %166 = vector.broadcast %164 : vector<8x1xf32> to vector<8x128xf32>
    %167 = arith.mulf %165, %166 : vector<8x128xf32>
    %168 = arith.addf %158, %167 : vector<8x128xf32>
    %169 = arith.mulf %149, %168 : vector<8x128xf32>
    %170 = arith.addf %128, %169 : vector<8x128xf32>
    %c0_44 = arith.constant 0 : index
    %c0_45 = arith.constant 0 : index
    %171 = vector.load %arg3[%c0_44, %c0_45] : memref<8x128xf32, #tpu.memory_space<vmem>>, vector<8x128xf32>
    tpu.vector_store %arg3[%c0_44, %c0_45], %170 {strides = array<i32>} : memref<8x128xf32, #tpu.memory_space<vmem>>, vector<8x128xf32>,
    return
  }
}

</mosaic_0001>

<bundles_post_ra>
// kernel: tpu_custom_call.1
= control target key start
LH: loop header
LB: loop body
LE: loop exit
PB: predicated region body
PF: predicated region fallthrough
CT: control target
= control target key end

     0   :  { %8 = vsyncpa [#allocation3], 0  ;;  %s1137_s0 = inlined_call_operand.hbm [shape: bf16[8,128], index: 0, kind: input, shape index: {}]   ;;  %s1138_s1 = inlined_call_operand.hbm [shape: bf16[4,128,128], index: 1, kind: input, shape index: {}]   ;;  %s1139_s2 = inlined_call_operand.hbm [shape: f32[16,128], index: 2, kind: input, shape index: {}]   ;;  %s1140_s3 = inlined_call_operand.hbm [shape: f32[8,128], index: 3, kind: output, shape index: {}]  }
   0x1   :  { %9 = vsyncpa [#allocation6], 0 }
   0x2   :  { %10 = vsyncpa [#allocation4], 0  ;;  %s983_s12 = smov [#allocation5]   ;;  %s889_s16 = scalar_lea.hbm %s1138_s1, 4096 }
   0x3   :  { %s26_s13 = sshll.u32 %s983_s12, 4  ;;  %p890_p0 = scmp.ne.s32.totalorder %s1138_s1, %s889_s16  ;;  %s27_s13 = int_to_ptr.vmem [resolvable:$true] %s26_s13 }
   0x4   :  { %p893_p1 = scmp.lt.u32.totalorder %s889_s16, %s1138_s1 }
   0x6   :  { %p895_p2 = pnand %p893_p1, %p890_p0 }
   0x8   :  { %898 = shalt.err (!%p895_p2)
}
   0x9   :  { %s899_s21 = scalar_lea.vmem %s27_s13, 4096  ;;  %p904_p4 = scmp.lt.s32.totalorder %s27_s13, %s27_s13 }
   0xa   :  { %p900_p3 = scmp.ne.s32.totalorder %s27_s13, %s899_s21  ;;  %p905_p5 = scmp.lt.s32.totalorder %s899_s21, %s899_s21 }
   0xc   :  { %p906_p6 = por %p905_p5, %p904_p4 }
   0xe   :  { %p907_p7 = pnand %p906_p6, %p900_p3 }
  0x10   :  { %910 = shalt.err (!%p907_p7)
}
  0x11   :  { %s984_s22 = smov 64   ;;  %s985_s23 = smov 4  }
  0x12   :  { %32 = dma.hbm_to_vmem [thread:$0]  %s1138_s1, 4096, %s27_s13, [#allocation6], %s984_s22, %s984_s22, %s985_s23  }
  0x13   :  { %s986_s26 = smov [#allocation2]   ;;  %s987_s28 = smov [#allocation7]  }
  0x14   :  { %s17_s27 = sshll.u32 %s986_s26, 4  ;;  %s38_s29 = sshll.u32 %s987_s28, 4  ;;  %s18_s27 = int_to_ptr.vmem [resolvable:$true] %s17_s27  ;;  %s39_s29 = int_to_ptr.vmem [resolvable:$true] %s38_s29 }
  0x15   :  { %s911_s5 = scalar_lea.hbm %s1137_s0, 64 }
  0x16   :  { %p912_p8 = scmp.ne.s32.totalorder %s1137_s0, %s911_s5  ;;  %p915_p9 = scmp.lt.u32.totalorder %s911_s5, %s1137_s0 }
  0x18   :  { %p917_p10 = pnand %p915_p9, %p912_p8 }
  0x1a   :  { %920 = shalt.err (!%p917_p10)
}
  0x1b   :  { %s921_s1 = scalar_lea.vmem %s18_s27, 64  ;;  %p926_p12 = scmp.lt.s32.totalorder %s18_s27, %s18_s27 }
  0x1c   :  { %p922_p11 = scmp.ne.s32.totalorder %s18_s27, %s921_s1  ;;  %p927_p13 = scmp.lt.s32.totalorder %s921_s1, %s921_s1 }
  0x1e   :  { %p928_p0 = por %p927_p13, %p926_p12 }
  0x20   :  { %p929_p1 = pnand %p928_p0, %p922_p11 }
  0x22   :  { %932 = shalt.err (!%p929_p1)
}
  0x23   :  { %20 = dma.hbm_to_vmem [thread:$0]  %s1137_s0, 64, %s18_s27, [#allocation3]  }
  0x24   :  { %s933_s14 = scalar_lea.hbm %s1139_s2, 256 }
  0x25   :  { %p934_p2 = scmp.ne.s32.totalorder %s1139_s2, %s933_s14  ;;  %p937_p3 = scmp.lt.u32.totalorder %s933_s14, %s1139_s2 }
  0x27   :  { %p939_p4 = pnand %p937_p3, %p934_p2 }
  0x29   :  { %942 = shalt.err (!%p939_p4)
}
  0x2a   :  { %s943_s19 = scalar_lea.vmem %s39_s29, 256  ;;  %p948_p6 = scmp.lt.s32.totalorder %s39_s29, %s39_s29 }
  0x2b   :  { %p944_p5 = scmp.ne.s32.totalorder %s39_s29, %s943_s19  ;;  %p949_p7 = scmp.lt.s32.totalorder %s943_s19, %s943_s19 }
  0x2d   :  { %p950_p8 = por %p949_p7, %p948_p6 }
  0x2f   :  { %p951_p9 = pnand %p950_p8, %p944_p5 }
  0x31   :  { %954 = shalt.err (!%p951_p9)
}
  0x32   :  { %s988_s0 = smov 128   ;;  %s989_s20 = smov 8  }
  0x33   :  { %44 = dma.hbm_to_vmem [thread:$0]  %s1139_s2, 256, %s39_s29, [#allocation6], %s988_s0, %s988_s0, %s989_s20  }
  0x34   :  { %977 = dma.done.wait [#allocation3], 64  }
  0x35   :  { %978 = vsyncadd [#allocation3], 4294967232 }
  0x36   :  { %979 = dma.done.wait [#allocation6], 4352  }
  0x37   :  { %980 = vsyncadd [#allocation6], 4294962944  ;;  %v990_v0 = vmov 0.0   ;;  %vm991_vm0 = vmmov 0   ;;  %v841_v1 = vld [vmem:[#allocation5] sm:$0xff]   ;;  %v842_v2 = vld [vmem:[#allocation5 + $0x8] sm:$0xff]   ;;  %v183_v39 = vlaneseq }
  0x38   :  { %751 = vmatprep.subr.bf16.mxu0 %v990_v0  ;;  %767 = vmatprep.mubr.msk.bf16.mxu0 %vm991_vm0, %v990_v0  ;;  %v843_v3 = vld [vmem:[#allocation5 + $0x10] sm:$0xff]   ;;  %v844_v4 = vld [vmem:[#allocation5 + $0x18] sm:$0xff]   ;;  %v845_v5 = vld [vmem:[#allocation5 + $0x20] sm:$0xff]   ;;  %s992_s2 = smov [#allocation8]  }
  0x39   :  { %771 = vmatprep.subr.bf16.mxu1 %v990_v0  ;;  %787 = vmatprep.mubr.msk.bf16.mxu1 %vm991_vm0, %v990_v0  ;;  %v846_v6 = vld [vmem:[#allocation5 + $0x28] sm:$0xff]   ;;  %v847_v7 = vld [vmem:[#allocation5 + $0x30] sm:$0xff]   ;;  %v848_v8 = vld [vmem:[#allocation5 + $0x38] sm:$0xff]   ;;  %v1073_v41 = vshrl.u32 %v183_v39, 7  ;;  %s673_s23 = sshll.u32 %s992_s2, 4  ;;  %s674_s23 = int_to_ptr.vmem [resolvable:$true] %s673_s23 }
  0x3a   :  { %752 = vmatpush3.bf16.msra.mxu0 %v841_v1  ;;  %v57_v9 = vld [vmem:[#allocation2] sm:$0xf]  ;;  %v849_v10 = vld [vmem:[#allocation5 + $0x40] sm:$0xff]   ;;  %v850_v11 = vld [vmem:[#allocation5 + $0x48] sm:$0xff]   ;;  %s955_s24 = scalar_lea.vmem %s674_s23, 128  ;;  %p960_p11 = scmp.lt.s32.totalorder %s674_s23, %s674_s23 }
  0x3b   :  { %753 = vmatprep.subr.bf16.mxu0 %v990_v0  ;;  %772 = vmatpush3.bf16.msra.mxu1 %v849_v10  ;;  %v851_v12 = vld [vmem:[#allocation5 + $0x50] sm:$0xff]   ;;  %v852_v13 = vld [vmem:[#allocation5 + $0x58] sm:$0xff]   ;;  %v853_v14 = vld [vmem:[#allocation5 + $0x60] sm:$0xff]   ;;  %v185_v42 = vsub.s32 0, %v1073_v41  ;;  %v190_v44 = vsub.s32 1, %v1073_v41  ;;  %p956_p10 = scmp.ne.s32.totalorder %s674_s23, %s955_s24  ;;  %p961_p12 = scmp.lt.s32.totalorder %s955_s24, %s955_s24 }
  0x3c   :  { %773 = vmatprep.subr.bf16.mxu1 %v990_v0  ;;  %v854_v15 = vld [vmem:[#allocation5 + $0x68] sm:$0xff]   ;;  %v855_v16 = vld [vmem:[#allocation5 + $0x70] sm:$0xff]   ;;  %v856_v17 = vld [vmem:[#allocation5 + $0x78] sm:$0xff]  }
  0x3d   :  { %v1076_v43 = vld [vmem:[#allocation7] sm:$0xff]  ;;  %v858_v55 = vld [vmem:[#allocation5 + $0x88] sm:$0xff]   ;;  %v859_v56 = vld [vmem:[#allocation5 + $0x90] sm:$0xff]   ;;  %p962_p13 = por %p961_p12, %p960_p11 }
  0x3e   :  { %754 = vmatpush3.bf16.msra.mxu0 %v842_v2  ;;  %v186_v46 = vrot.slane %v1076_v43, %v185_v42  ;;  %v191_v49 = vrot.slane %v1076_v43, %v190_v44  ;;  %v857_v54 = vld [vmem:[#allocation5 + $0x80] sm:$0xff]   ;;  %v860_v57 = vld [vmem:[#allocation5 + $0x98] sm:$0xff]   ;;  %v862_v59 = vld [vmem:[#allocation5 + $0xa8] sm:$0xff]  }
  0x3f   :  { %755 = vmatprep.subr.bf16.mxu0 %v990_v0  ;;  %774 = vmatpush3.bf16.msra.mxu1 %v850_v11  ;;  %v861_v58 = vld [vmem:[#allocation5 + $0xa0] sm:$0xff]   ;;  %v863_v60 = vld [vmem:[#allocation5 + $0xb0] sm:$0xff]   ;;  %v864_v61 = vld [vmem:[#allocation5 + $0xb8] sm:$0xff]   ;;  %p963_p0 = pnand %p962_p13, %p956_p10 }
  0x40   :  { %775 = vmatprep.subr.bf16.mxu1 %v990_v0  ;;  %v872_v39 = vld [vmem:[#allocation5 + $0xf8] sm:$0xff]  }
  0x42   :  { %756 = vmatpush3.bf16.msra.mxu0 %v843_v3 }
  0x43   :  { %757 = vmatprep.subr.bf16.mxu0 %v990_v0  ;;  %776 = vmatpush3.bf16.msra.mxu1 %v851_v12 }
  0x44   :  { %777 = vmatprep.subr.bf16.mxu1 %v990_v0 }
  0x46   :  { %758 = vmatpush3.bf16.msra.mxu0 %v844_v4 }
  0x47   :  { %759 = vmatprep.subr.bf16.mxu0 %v990_v0  ;;  %778 = vmatpush3.bf16.msra.mxu1 %v852_v13 }
  0x48   :  { %779 = vmatprep.subr.bf16.mxu1 %v990_v0 }
  0x4a   :  { %760 = vmatpush3.bf16.msra.mxu0 %v845_v5 }
  0x4b   :  { %761 = vmatprep.subr.bf16.mxu0 %v990_v0  ;;  %780 = vmatpush3.bf16.msra.mxu1 %v853_v14 }
  0x4c   :  { %781 = vmatprep.subr.bf16.mxu1 %v990_v0 }
  0x4e   :  { %762 = vmatpush3.bf16.msra.mxu0 %v846_v6 }
  0x4f   :  { %763 = vmatprep.subr.bf16.mxu0 %v990_v0  ;;  %782 = vmatpush3.bf16.msra.mxu1 %v854_v15 }
  0x50   :  { %783 = vmatprep.subr.bf16.mxu1 %v990_v0 }
  0x52   :  { %764 = vmatpush3.bf16.msra.mxu0 %v847_v7 }
  0x53   :  { %765 = vmatprep.subr.bf16.mxu0 %v990_v0  ;;  %784 = vmatpush3.bf16.msra.mxu1 %v855_v16 }
  0x54   :  { %785 = vmatprep.subr.bf16.mxu1 %v990_v0 }
  0x56   :  { %766 = vmatpush3.bf16.msra.mxu0 %v848_v8 }
  0x57   :  { %791 = vmatprep.subr.bf16.mxu0 %v990_v0  ;;  %786 = vmatpush3.bf16.msra.mxu1 %v856_v17 }
  0x58   :  { %811 = vmatprep.subr.bf16.mxu1 %v990_v0 }
  0x59   :  { %768 = vmatmul.mubr.bf16.vlgmr.msra.gmra.mrb[0].mxu0 %v57_v9 }
  0x5a   :  { %807 = vmatprep.mubr.msk.bf16.mxu0 %vm991_vm0, %v990_v0  ;;  %792 = vmatpush3.bf16.msra.mxu0 %v857_v54 }
  0x5b   :  { %793 = vmatprep.subr.bf16.mxu0 %v990_v0 }
  0x5e   :  { %794 = vmatpush3.bf16.msra.mxu0 %v858_v55 }
  0x5f   :  { %795 = vmatprep.subr.bf16.mxu0 %v990_v0 }
  0x62   :  { %796 = vmatpush3.bf16.msra.mxu0 %v859_v56 }
  0x63   :  { %797 = vmatprep.subr.bf16.mxu0 %v990_v0 }
  0x66   :  { %798 = vmatpush3.bf16.msra.mxu0 %v860_v57 }
  0x67   :  { %799 = vmatprep.subr.bf16.mxu0 %v990_v0 }
  0x6a   :  { %800 = vmatpush3.bf16.msra.mxu0 %v861_v58 }
  0x6b   :  { %801 = vmatprep.subr.bf16.mxu0 %v990_v0 }
  0x6e   :  { %802 = vmatpush3.bf16.msra.mxu0 %v862_v59 }
  0x6f   :  { %803 = vmatprep.subr.bf16.mxu0 %v990_v0 }
  0x72   :  { %804 = vmatpush3.bf16.msra.mxu0 %v863_v60 }
  0x73   :  { %805 = vmatprep.subr.bf16.mxu0 %v990_v0 }
  0x76   :  { %806 = vmatpush3.bf16.msra.mxu0 %v864_v61 }
 0x12c   :  { %v156_v18 = vpop.f32.mrb[0].mxu0 }
 0x12d   :  { %v162_v19 = vrot.slane %v156_v18, 4  ;;  %v168_v20 = vmul.f32 %v156_v18, %v156_v18  ;;  %v769_v21 = vpop.f32.mrb[1].mxu0 }
 0x12e   :  { %v159_v22 = vpop.f32.mrb[2].mxu0  ;;  %v323_v21 = vsub.s32 2, %v1073_v41 }
 0x12f   :  { %v163_v23 = vadd.f32 %v162_v19, %v156_v18  ;;  %v169_v24 = vrot.slane %v168_v20, 4  ;;  %v770_v25 = vpop.f32.mrb[3].mxu0  ;;  %v328_v22 = vsub.s32 3, %v1073_v41 }
 0x131   :  { %v164_v26 = vrot.slane %v163_v23, 2  ;;  %v170_v27 = vadd.f32 %v169_v24, %v168_v20  ;;  %v324_v24 = vrot.slane %v1076_v43, %v323_v21 }
 0x133   :  { %v165_v28 = vadd.f32 %v164_v26, %v163_v23  ;;  %v171_v29 = vrot.slane %v170_v27, 2 }
 0x135   :  { %v166_v30 = vrot.slane %v165_v28, 1  ;;  %v172_v31 = vadd.f32 %v171_v29, %v170_v27  ;;  %v329_v27 = vrot.slane %v1076_v43, %v328_v22 }
 0x137   :  { %v167_v32 = vadd.f32 %v166_v30, %v165_v28  ;;  %v173_v33 = vrot.slane %v172_v31, 1 }
 0x139   :  { %v174_v34 = vadd.f32 %v173_v33, %v172_v31  ;;  %v175_v35 = vmul.f32 0.125, %v167_v32  ;;  %v865_v32 = vld [vmem:[#allocation5 + $0xc0] sm:$0xff]   ;;  %v866_v33 = vld [vmem:[#allocation5 + $0xc8] sm:$0xff]  }
 0x13b   :  { %v176_v36 = vmul.f32 0.125, %v174_v34  ;;  %v177_v37 = vmul.f32 %v175_v35, %v175_v35  ;;  %v179_v45 = vsub.f32 %v156_v18, %v175_v35  ;;  %v867_v34 = vld [vmem:[#allocation5 + $0xd0] sm:$0xff]   ;;  %v868_v35 = vld [vmem:[#allocation5 + $0xd8] sm:$0xff]  }
 0x13d   :  { %v178_v38 = vsub.f32 %v176_v36, %v177_v37  ;;  %v869_v36 = vld [vmem:[#allocation5 + $0xe0] sm:$0xff]   ;;  %v870_v37 = vld [vmem:[#allocation5 + $0xe8] sm:$0xff]  }
 0x13f   :  { %v180_v40 = vadd.f32 1e-05, %v178_v38  ;;  %v871_v38 = vld [vmem:[#allocation5 + $0xf0] sm:$0xff]  }
 0x141   :  { %873 = vrsqrt.f32 %v180_v40 }
 0x14b   :  { %v874_v47 = vpop.eup %873 }
 0x14c   :  { %v182_v48 = vmul.f32 %v874_v47, %v179_v45 }
 0x14e   :  { %v187_v50 = vmul.f32 %v186_v46, %v182_v48 }
 0x150   :  { %v192_v51 = vadd.f32 %v191_v49, %v187_v50 }
 0x152   :  { %v193_v52 = vmax.f32 %v192_v51, 0.0 }
 0x154   :  { %v194_v53 = vpack.c.bf16 %v193_v52, %v193_v52 }
 0x156   :  { %788 = vmatmul.mubr.bf16.vlgmr.msra.gmra.mrb[0].mxu1 %v194_v53 }
 0x157   :  { %827 = vmatprep.mubr.msk.bf16.mxu1 %vm991_vm0, %v990_v0  ;;  %812 = vmatpush3.bf16.msra.mxu1 %v865_v32 }
 0x158   :  { %813 = vmatprep.subr.bf16.mxu1 %v990_v0 }
 0x15b   :  { %814 = vmatpush3.bf16.msra.mxu1 %v866_v33 }
 0x15c   :  { %815 = vmatprep.subr.bf16.mxu1 %v990_v0 }
 0x15f   :  { %816 = vmatpush3.bf16.msra.mxu1 %v867_v34 }
 0x160   :  { %817 = vmatprep.subr.bf16.mxu1 %v990_v0 }
 0x163   :  { %818 = vmatpush3.bf16.msra.mxu1 %v868_v35 }
 0x164   :  { %819 = vmatprep.subr.bf16.mxu1 %v990_v0 }
 0x167   :  { %820 = vmatpush3.bf16.msra.mxu1 %v869_v36 }
 0x168   :  { %821 = vmatprep.subr.bf16.mxu1 %v990_v0 }
 0x16b   :  { %822 = vmatpush3.bf16.msra.mxu1 %v870_v37  ;;  %v599_v37 = vsub.s32 6, %v1073_v41 }
 0x16c   :  { %823 = vmatprep.subr.bf16.mxu1 %v990_v0 }
 0x16f   :  { %824 = vmatpush3.bf16.msra.mxu1 %v871_v38  ;;  %v604_v38 = vsub.s32 7, %v1073_v41 }
 0x170   :  { %825 = vmatprep.subr.bf16.mxu1 %v990_v0 }
 0x173   :  { %826 = vmatpush3.bf16.msra.mxu1 %v872_v39 }
 0x229   :  { %v294_v62 = vpop.f32.mrb[0].mxu1 }
 0x22a   :  { %v300_v63 = vrot.slane %v294_v62, 4  ;;  %v306_v1 = vmul.f32 %v294_v62, %v294_v62  ;;  %v789_v2 = vpop.f32.mrb[1].mxu1 }
 0x22b   :  { %v297_v3 = vpop.f32.mrb[2].mxu1  ;;  %v461_v2 = vsub.s32 4, %v1073_v41 }
 0x22c   :  { %v301_v4 = vadd.f32 %v300_v63, %v294_v62  ;;  %v307_v5 = vrot.slane %v306_v1, 4  ;;  %v790_v6 = vpop.f32.mrb[3].mxu1  ;;  %v466_v3 = vsub.s32 5, %v1073_v41 }
 0x22e   :  { %v302_v7 = vrot.slane %v301_v4, 2  ;;  %v308_v8 = vadd.f32 %v307_v5, %v306_v1  ;;  %v462_v5 = vrot.slane %v1076_v43, %v461_v2 }
 0x230   :  { %v303_v9 = vadd.f32 %v302_v7, %v301_v4  ;;  %v309_v10 = vrot.slane %v308_v8, 2 }
 0x232   :  { %v304_v11 = vrot.slane %v303_v9, 1  ;;  %v310_v12 = vadd.f32 %v309_v10, %v308_v8  ;;  %v467_v8 = vrot.slane %v1076_v43, %v466_v3 }
 0x234   :  { %v305_v13 = vadd.f32 %v304_v11, %v303_v9  ;;  %v311_v14 = vrot.slane %v310_v12, 1 }
 0x236   :  { %v312_v15 = vadd.f32 %v311_v14, %v310_v12  ;;  %v313_v16 = vmul.f32 0.125, %v305_v13 }
 0x238   :  { %v314_v17 = vmul.f32 0.125, %v312_v15  ;;  %v315_v18 = vmul.f32 %v313_v16, %v313_v16  ;;  %v317_v23 = vsub.f32 %v294_v62, %v313_v16 }
 0x23a   :  { %v316_v19 = vsub.f32 %v314_v17, %v315_v18 }
 0x23c   :  { %v318_v20 = vadd.f32 1e-05, %v316_v19 }
 0x23e   :  { %875 = vrsqrt.f32 %v318_v20 }
 0x248   :  { %v876_v25 = vpop.eup %875 }
 0x249   :  { %v320_v26 = vmul.f32 %v876_v25, %v317_v23 }
 0x24b   :  { %v325_v28 = vmul.f32 %v324_v24, %v320_v26 }
 0x24d   :  { %v330_v29 = vadd.f32 %v329_v27, %v325_v28 }
 0x24f   :  { %v331_v30 = vmax.f32 %v330_v29, 0.0 }
 0x251   :  { %v332_v31 = vpack.c.bf16 %v331_v30, %v331_v30 }
 0x253   :  { %808 = vmatmul.mubr.bf16.vlgmr.msra.gmra.mrb[4].mxu0 %v332_v31 }
 0x326   :  { %v432_v40 = vpop.f32.mrb[4].mxu0 }
 0x327   :  { %v438_v45 = vrot.slane %v432_v40, 4  ;;  %v444_v46 = vmul.f32 %v432_v40, %v432_v40  ;;  %v809_v47 = vpop.f32.mrb[5].mxu0 }
 0x328   :  { %v435_v48 = vpop.f32.mrb[6].mxu0 }
 0x329   :  { %v439_v49 = vadd.f32 %v438_v45, %v432_v40  ;;  %v445_v50 = vrot.slane %v444_v46, 4  ;;  %v810_v51 = vpop.f32.mrb[7].mxu0  ;;  %v605_v48 = vrot.slane %v1076_v43, %v604_v38 }
 0x32b   :  { %v440_v52 = vrot.slane %v439_v49, 2  ;;  %v446_v53 = vadd.f32 %v445_v50, %v444_v46  ;;  %v56_v46 = vld [vmem:[#allocation7 + $0x8] sm:$0xff] }
 0x32c   :  { %v626_v50 = vrot.slane %v56_v46, %v461_v2  ;;  %v610_v2 = vrot.slane %v56_v46, %v185_v42 }
 0x32d   :  { %v441_v54 = vadd.f32 %v440_v52, %v439_v49  ;;  %v447_v55 = vrot.slane %v446_v53, 2 }
 0x32f   :  { %v442_v56 = vrot.slane %v441_v54, 1  ;;  %v448_v57 = vadd.f32 %v447_v55, %v446_v53  ;;  %v638_v53 = vrot.slane %v56_v46, %v599_v37 }
 0x331   :  { %v443_v58 = vadd.f32 %v442_v56, %v441_v54  ;;  %v449_v59 = vrot.slane %v448_v57, 1  ;;  %v633_v56 = vrot.slane %v56_v46, %v328_v22 }
 0x333   :  { %v450_v60 = vadd.f32 %v449_v59, %v448_v57  ;;  %v451_v61 = vmul.f32 0.125, %v443_v58  ;;  %v645_v57 = vrot.slane %v56_v46, %v466_v3 }
 0x335   :  { %v452_v0 = vmul.f32 0.125, %v450_v60  ;;  %v453_v62 = vmul.f32 %v451_v61, %v451_v61  ;;  %v455_v4 = vsub.f32 %v432_v40, %v451_v61  ;;  %v600_v40 = vrot.slane %v1076_v43, %v599_v37 }
 0x337   :  { %v454_v63 = vsub.f32 %v452_v0, %v453_v62 }
 0x339   :  { %v456_v1 = vadd.f32 1e-05, %v454_v63 }
 0x33b   :  { %877 = vrsqrt.f32 %v456_v1 }
 0x345   :  { %v878_v6 = vpop.eup %877 }
 0x346   :  { %v458_v7 = vmul.f32 %v878_v6, %v455_v4  ;;  %v616_v6 = vrot.slane %v56_v46, %v190_v44 }
 0x348   :  { %v463_v9 = vmul.f32 %v462_v5, %v458_v7 }
 0x34a   :  { %v468_v10 = vadd.f32 %v467_v8, %v463_v9 }
 0x34c   :  { %v469_v11 = vmax.f32 %v468_v10, 0.0  ;;  %v621_v10 = vrot.slane %v56_v46, %v323_v21 }
 0x34e   :  { %v470_v12 = vpack.c.bf16 %v469_v11, %v469_v11 }
 0x350   :  { %828 = vmatmul.mubr.bf16.vlgmr.msra.gmra.mrb[4].mxu1 %v470_v12 }
 0x423   :  { %v570_v13 = vpop.f32.mrb[4].mxu1 }
 0x424   :  { %v576_v14 = vrot.slane %v570_v13, 4  ;;  %v582_v15 = vmul.f32 %v570_v13, %v570_v13  ;;  %v829_v16 = vpop.f32.mrb[5].mxu1 }
 0x425   :  { %v573_v17 = vpop.f32.mrb[6].mxu1 }
 0x426   :  { %v577_v18 = vadd.f32 %v576_v14, %v570_v13  ;;  %v583_v19 = vrot.slane %v582_v15, 4  ;;  %v830_v20 = vpop.f32.mrb[7].mxu1 }
 0x428   :  { %v578_v23 = vrot.slane %v577_v18, 2  ;;  %v584_v24 = vadd.f32 %v583_v19, %v582_v15 }
 0x42a   :  { %v579_v25 = vadd.f32 %v578_v23, %v577_v18  ;;  %v585_v26 = vrot.slane %v584_v24, 2 }
 0x42c   :  { %v580_v27 = vrot.slane %v579_v25, 1  ;;  %v586_v28 = vadd.f32 %v585_v26, %v584_v24 }
 0x42e   :  { %v581_v29 = vadd.f32 %v580_v27, %v579_v25  ;;  %v587_v30 = vrot.slane %v586_v28, 1 }
 0x430   :  { %v588_v31 = vadd.f32 %v587_v30, %v586_v28  ;;  %v589_v32 = vmul.f32 0.125, %v581_v29 }
 0x432   :  { %v590_v33 = vmul.f32 0.125, %v588_v31  ;;  %v591_v34 = vmul.f32 %v589_v32, %v589_v32  ;;  %v593_v39 = vsub.f32 %v570_v13, %v589_v32 }
 0x434   :  { %v592_v35 = vsub.f32 %v590_v33, %v591_v34 }
 0x436   :  { %v594_v36 = vadd.f32 1e-05, %v592_v35 }
 0x438   :  { %879 = vrsqrt.f32 %v594_v36 }
 0x442   :  { %v880_v45 = vpop.eup %879 }
 0x443   :  { %v596_v47 = vmul.f32 %v880_v45, %v593_v39 }
 0x445   :  { %v601_v49 = vmul.f32 %v600_v40, %v596_v47 }
 0x447   :  { %v606_v51 = vadd.f32 %v605_v48, %v601_v49 }
 0x449   :  { %v627_v52 = vadd.f32 %v626_v50, %v606_v51  ;;  %v639_v54 = vadd.f32 %v638_v53, %v606_v51  ;;  %v611_v4 = vmul.f32 %v610_v2, %v606_v51 }
 0x44b   :  { %628 = vmax.xlane.f32.xlu0 %v627_v52 }
 0x44f   :  { %640 = vmax.xlane.f32.xlu0 %v639_v54 }
 0x4d8   :  { %v629_v55 = vpop.xlane.xlu0 %628 }
 0x4d9   :  { %v634_v59 = vmul.f32 %v633_v56, %v629_v55 }
 0x4dc   :  { %v641_v58 = vpop.xlane.xlu0 %640 }
 0x4dd   :  { %v646_v60 = vmul.f32 %v645_v57, %v641_v58 }
 0x4df   :  { %v647_v61 = vadd.f32 %v646_v60, %v634_v59 }
 0x4e1   :  { %v648_v0 = vsub.f32 %v606_v51, %v647_v61 }
 0x4e3   :  { %v649_v62 = vmul.f32 1.442695, %v648_v0 }
 0x4e5   :  { %881 = vpow2.f32 %v649_v62 }
 0x4e6   :  { %883 = vtanh.f32 %v611_v4 }
 0x4ef   :  { %v882_v43 = vpop.eup %881 }
 0x4f0   :  { %v651_v63 = vmul.f32 %v882_v43, %v633_v56  ;;  %v657_v1 = vmul.f32 %v882_v43, %v645_v57  ;;  %v884_v3 = vpop.eup %883 }
 0x4f1   :  { %v617_v9 = vmul.f32 %v884_v3, %v616_v6 }
 0x4f2   :  { %652 = vadd.xlane.f32.xlu1 %v651_v63 }
 0x4f3   :  { %v622_v42 = vadd.f32 %v621_v10, %v617_v9 }
 0x4f6   :  { %658 = vadd.xlane.f32.xlu1 %v657_v1 }
 0x57f   :  { %v653_v5 = vpop.xlane.xlu1 %652 }
 0x580   :  { %885 = vrcp.f32 %v653_v5 }
 0x583   :  { %v659_v22 = vpop.xlane.xlu1 %658 }
 0x584   :  { %887 = vrcp.f32 %v659_v22 }
 0x58a   :  { %v886_v7 = vpop.eup %885 }
 0x58b   :  { %v656_v11 = vmul.f32 %v886_v7, %v633_v56 }
 0x58e   :  { %v888_v8 = vpop.eup %887 }
 0x58f   :  { %v662_v12 = vmul.f32 %v888_v8, %v645_v57 }
 0x591   :  { %v663_v13 = vadd.f32 %v662_v12, %v656_v11 }
 0x593   :  { %v664_v14 = vmul.f32 %v882_v43, %v663_v13 }
 0x595   :  { %v665_v15 = vadd.f32 %v664_v14, %v622_v42 }
 0x597   :  { %666 = vst [vmem:[#allocation8] sm:$0xff] %v665_v15 }
 0x598   :  { %966 = shalt.err (!%p963_p0)
}
 0x599   :  { %s967_s27 = scalar_lea.hbm %s1140_s3, 128 }
 0x59a   :  { %p968_p1 = scmp.ne.s32.totalorder %s1140_s3, %s967_s27  ;;  %p971_p2 = scmp.lt.u32.totalorder %s967_s27, %s1140_s3 }
 0x59c   :  { %p973_p3 = pnand %p971_p2, %p968_p1 }
 0x59e   :  { %976 = shalt.err (!%p973_p3)
}
 0x59f   :  { %676 = dma.vmem_to_hbm [thread:$0]  %s674_s23, 128, %s1140_s3, [#allocation4]  }
 0x5a0   :  { %981 = dma.done.wait [#allocation4], 128  }
 0x5a1   :  { %982 = vsyncadd [#allocation4], 4294967168 }
 0x5a2   :  { %680 = vsyncpa [#allocation3], 1 }
 0x5a3   :  { %681 = vsyncpa [#allocation6], 1 }
 0x5a4   :  { %682 = vsyncpa [#allocation4], 1 }

</bundles_post_ra>
